<compile_context>
chip_gen: v6e
topology: v6e:2x2x1
jax: 0.10.0
libtpu: 0.0.40
codegen_flags: <defaults>
</compile_context>

<pallas_src>
import jax
import jax.numpy as jnp
from jax.experimental import pallas as pl
from jax.experimental.pallas import tpu as pltpu


# ----------------------------- Pallas kernels ------------------------------ #

def _hard_sigmoid_rt_kernel(eta_ref, z_ref, o_ref):
    """One grid step = (sample i, row-tile r).

    eta_ref : SMEM [6*N] f32 (scalar-prefetched), packed per sample as
              [bias, slope, e0, e1, e2, e3] with slope = (e1-e0)/(e3-e2),
              bias = e0 - slope*e2.
    z_ref   : VMEM [tr, cols] tile of z[i]   (leading sample dim squeezed)
    o_ref   : VMEM [tr, cols] tile of a[i]
    """
    i = pl.program_id(0)
    base = 6 * i
    bias = eta_ref[base + 0]
    slope = eta_ref[base + 1]
    e0 = eta_ref[base + 2]
    e1 = eta_ref[base + 3]
    e2 = eta_ref[base + 4]
    e3 = eta_ref[base + 5]

    z = z_ref[...]
    lin = bias + slope * z
    # Exact nested-where form of the PyTorch reference (robust to e3 <= e2).
    a = jnp.where(z < e2, e0, jnp.where(z <= e3, lin, e1))
    o_ref[...] = a.astype(o_ref.dtype)


def _hard_sigmoid_rt_small_kernel(eta_ref, z_ref, o_ref):
    """Small-input path: single grid step, all samples resident in VMEM.

    z_ref / o_ref : VMEM [N, rows, cols]; loop over samples is unrolled with
    static indices (N is tiny because the total problem is <= ~2 MiB).
    """
    n = z_ref.shape[0]
    for i in range(n):
        base = 6 * i
        bias = eta_ref[base + 0]
        slope = eta_ref[base + 1]
        e0 = eta_ref[base + 2]
        e1 = eta_ref[base + 3]
        e2 = eta_ref[base + 4]
        e3 = eta_ref[base + 5]
        z = z_ref[i]
        lin = bias + slope * z
        a = jnp.where(z < e2, e0, jnp.where(z <= e3, lin, e1))
        o_ref[i] = a.astype(o_ref.dtype)


# ------------------------------ wrapper ----------------------------------- #

def _pack_eta(eta):
    """eta [N, 4] = (e0, e1, e2, e3) -> flat [6*N] = (bias, slope, e0..e3).

    No div-by-zero guard: if e3 == e2 the slope is inf/NaN exactly as in the
    PyTorch reference, and the nested where in the kernel reproduces the same
    e0 / NaN / e1 pattern.
    """
    eta = eta.astype(jnp.float32)
    e0, e1, e2, e3 = eta[:, 0], eta[:, 1], eta[:, 2], eta[:, 3]
    slope = (e1 - e0) / (e3 - e2)
    bias = e0 - slope * e2
    return jnp.stack([bias, slope, e0, e1, e2, e3], axis=1).reshape(-1)


def _lane_dense_view(R, C):
    """Choose a per-sample (rows, cols) view whose last dim is lane-dense."""
    if C % 128 == 0:
        return R, C
    total = R * C
    if total % 128 == 0:
        cols = 128
        # widen lanes (powers of two) up to 32768 for unmasked, wide stores
        while total % (cols * 2) == 0 and cols * 2 <= 128 * 256:
            cols *= 2
        return total // cols, cols
    # R*C not a multiple of 128: keep the natural (R, C) view and tile rows
    # with full-C blocks (the "full last dim" rule). Stores on the ragged
    # lanes are masked, but row tiling / double-buffering are preserved.
    return R, C


def _choose_row_tile(rows, cols, itemsize, target_tile_bytes,
                     min_grid_steps, n_samples):
    """Row tile: sublane-aligned, VMEM-budgeted, >= min_grid_steps grid steps."""
    sub = max(8, 32 // max(1, itemsize))    # f32 -> 8, bf16 -> 16, int8/fp8 -> 32
    if rows <= sub:
        return rows
    tr = target_tile_bytes // max(1, cols * itemsize)
    tr = max(sub, (tr // sub) * sub)
    tr = min(tr, rows)
    # Keep enough total grid steps that v7x's 2 TensorCores both get work
    # (no-op on v5e/v6e single-TC chips).
    want = -(-min_grid_steps // max(1, n_samples))      # ceil
    if want > 1 and rows >= want * sub:
        cap = max(sub, (rows // want // sub) * sub)
        tr = min(tr, cap)
    # Prefer a tile that divides rows (no ragged tail), but never shrink >4x.
    if rows % tr != 0:
        lo = max(sub, (tr // 4 // sub) * sub)
        cand = tr - sub
        while cand >= lo:
            if rows % cand == 0:
                tr = cand
                break
            cand -= sub
    return tr


def hard_sigmoid_rt_forward(z, eta, *, target_tile_bytes=2 << 20,
                            vmem_limit_bytes=32 << 20,
                            small_bytes_threshold=2 << 20,
                            min_grid_steps=8,
                            out_dtype=None,
                            donate_input=False):
    """z: [N, R, C], eta: [N, 4] f32 (e0, e1, e2, e3) -> a: [N, R, C].

    out_dtype=jnp.bfloat16 halves write traffic (~25% wall-clock) if the
    consumer tolerates it; default preserves z.dtype.
    """
    N, R, C = z.shape
    out_dtype = z.dtype if out_dtype is None else jnp.dtype(out_dtype)
    itemsize = z.dtype.itemsize

    rows, cols = _lane_dense_view(R, C)
    z2 = z.reshape(N, rows, cols)
    eta_packed = _pack_eta(eta)

    n_elem = N * rows * cols
    cost = pl.CostEstimate(
        flops=6 * n_elem,
        transcendentals=0,
        bytes_accessed=n_elem * (itemsize + out_dtype.itemsize))
    # Donating z saves an N*R*C HBM allocation when z is dead after the call.
    io_alias = {1: 0} if (donate_input and out_dtype == z.dtype) else {}

    if n_elem * itemsize <= small_bytes_threshold:
        # --- small-input fast path: one grid step, no per-step overhead --- #
        grid_spec = pltpu.PrefetchScalarGridSpec(
            num_scalar_prefetch=1,                     # packed eta -> SMEM
            grid=(1,),
            in_specs=[pl.BlockSpec((N, rows, cols),
                                   lambda s, eta_ref: (0, 0, 0))],
            out_specs=pl.BlockSpec((N, rows, cols),
                                   lambda s, eta_ref: (0, 0, 0)),
        )
        out = pl.pallas_call(
            _hard_sigmoid_rt_small_kernel,
            out_shape=jax.ShapeDtypeStruct((N, rows, cols), out_dtype),
            grid_spec=grid_spec,
            compiler_params=pltpu.CompilerParams(
                dimension_semantics=("arbitrary",),
                vmem_limit_bytes=vmem_limit_bytes),
            cost_estimate=cost,
            input_output_aliases=io_alias,
        )(eta_packed, z2)
        return out.reshape(N, R, C)

    # --- streaming tiled path --------------------------------------------- #
    tr = _choose_row_tile(rows, cols, itemsize, target_tile_bytes,
                          min_grid_steps, N)
    num_r = pl.cdiv(rows, tr)

    grid_spec = pltpu.PrefetchScalarGridSpec(
        num_scalar_prefetch=1,                         # packed eta -> SMEM
        grid=(N, num_r),
        in_specs=[pl.BlockSpec((pl.Squeezed(), tr, cols),
                               lambda i, r, eta_ref: (i, r, 0))],
        out_specs=pl.BlockSpec((pl.Squeezed(), tr, cols),
                               lambda i, r, eta_ref: (i, r, 0)),
    )
    out = pl.pallas_call(
        _hard_sigmoid_rt_kernel,
        out_shape=jax.ShapeDtypeStruct((N, rows, cols), out_dtype),
        grid_spec=grid_spec,
        compiler_params=pltpu.CompilerParams(
            dimension_semantics=("parallel", "parallel"),
            vmem_limit_bytes=vmem_limit_bytes),
        cost_estimate=cost,
        input_output_aliases=io_alias,
    )(eta_packed, z2)
    return out.reshape(N, R, C)


# ----------------------- eta computation (plain-JAX glue) ------------------ #

def _synthetic_package(key):
    """Deterministic stand-ins for the .package checkpoint contents."""
    k1, k2 = jax.random.split(key)
    # Normalization ranges (X: RT features, Y: eta outputs).  Y ranges chosen
    # so that eta[:, 3] > eta[:, 2] always (left knee < right knee).
    X_min = jnp.array([1.0e3, 1.0e-6, 1.0e-7, 1.0], jnp.float32)
    X_max = jnp.array([1.0e6, 1.0e-5, 1.0e-6, 20.0], jnp.float32)
    Y_min = jnp.array([0.00, 0.80, -2.0, 0.5], jnp.float32)
    Y_max = jnp.array([0.20, 1.00, -0.5, 2.0], jnp.float32)
    hidden = 16
    W1 = jax.random.normal(k1, (4, hidden), jnp.float32) * 0.5
    b1 = jnp.zeros((hidden,), jnp.float32)
    W2 = jax.random.normal(k2, (hidden, 4), jnp.float32) * 0.5
    b2 = jnp.zeros((4,), jnp.float32)
    return dict(X_min=X_min, X_max=X_max, Y_min=Y_min, Y_max=Y_max,
                W1=W1, b1=b1, W2=W2, b2=b2)


def _eta_estimator(x, p):
    h = jax.nn.relu(x @ p["W1"] + p["b1"])
    return jax.nn.sigmoid(h @ p["W2"] + p["b2"])     # eta_n in (0, 1)


def compute_eta(rt_, N, epsilon, pkg, noise_key):
    """Mirror of RT -> RT_noisy -> RTn_extend -> eta from the module."""
    X_min, X_max = pkg["X_min"], pkg["X_max"]
    Y_min, Y_max = pkg["Y_min"], pkg["Y_max"]

    rt_temp = jax.nn.sigmoid(rt_)                                     # [3]
    RTn = jnp.concatenate([rt_temp, jnp.zeros((1,), jnp.float32)])    # [4]
    RT = RTn * (X_max - X_min) + X_min                                # [4]

    RT_mean = jnp.tile(RT[None, :], (N, 1))                           # [N, 4]
    noise = (jax.random.uniform(noise_key, RT_mean.shape, jnp.float32)
             * 2.0 - 1.0) * epsilon + 1.0
    RT_var = RT_mean * noise                                          # RT_noisy

    RT_extend = jnp.stack(
        [RT_var[:, 0], RT_var[:, 1], RT_var[:, 2],
         RT_var[:, 1] / RT_var[:, 2]], axis=1)                        # [N, 4]
    RTn_extend = (RT_extend - X_min) / (X_max - X_min)

    eta_n = _eta_estimator(RTn_extend, pkg)                           # [N, 4]
    eta = eta_n * (Y_max - Y_min) + Y_min
    return eta


def reference_forward(z, eta):
    """Pure-JAX reference of the PyTorch forward loop (nested where form)."""
    def per_sample(zi, ei):
        e0, e1, e2, e3 = ei[0], ei[1], ei[2], ei[3]
        lin = e0 + (e1 - e0) / (e3 - e2) * (zi - e2)
        return jnp.where(zi < e2, e0, jnp.where(zi <= e3, lin, e1))
    return jax.vmap(per_sample)(z, eta)


# --------------------------------- main ------------------------------------ #

if __name__ == "__main__":
    key = jax.random.PRNGKey(0)
    k_pkg, k_noise, k_z, k_z2, k_z3 = jax.random.split(key, 5)

    # args stand-ins
    N_train = 4
    e_train = 0.1
    HS_Rn, HS_Wn, HS_Ln = 0.1, 0.2, 0.3
    rt_ = jnp.array([HS_Rn, HS_Wn, HS_Ln], jnp.float32)        # the Parameter

    pkg = _synthetic_package(k_pkg)
    eta = compute_eta(rt_, N_train, e_train, pkg, k_noise)     # [N, 4]

    # 1) tiny input consistent with forward(): z[i, :, :] -> small-input path
    R, C = 16, 256
    z = jax.random.normal(k_z, (N_train, R, C), jnp.float32) * 2.0
    a = jax.block_until_ready(hard_sigmoid_rt_forward(z, eta))
    a_ref = reference_forward(z, eta)
    assert a.shape == z.shape and a.dtype == z.dtype
    assert jnp.allclose(a, a_ref, atol=1e-5, rtol=1e-5)

    # 2) lane-dense tiled path (force past the small-input threshold)
    R2, C2 = 96, 384
    z2 = jax.random.normal(k_z2, (N_train, R2, C2), jnp.float32) * 3.0
    a2 = jax.block_until_ready(
        hard_sigmoid_rt_forward(z2, eta, small_bytes_threshold=0))
    assert jnp.allclose(a2, reference_forward(z2, eta), atol=1e-5, rtol=1e-5)

    # 3) non-128-divisible fallback: (R, C) view, full-last-dim row tiles
    R3, C3 = 136, 200
    z3 = jax.random.normal(k_z3, (N_train, R3, C3), jnp.float32) * 3.0
    a3 = jax.block_until_ready(
        hard_sigmoid_rt_forward(z3, eta, small_bytes_threshold=0))
    assert jnp.allclose(a3, reference_forward(z3, eta), atol=1e-5, rtol=1e-5)

    print("KERNEL_OK")
</pallas_src>

<mosaic_0001>
module attributes {stable_mosaic.version = 11 : i64} {
  func.func @_hard_sigmoid_rt_small_kernel(%arg0: i32, %arg1: memref<24xf32, #tpu.memory_space<smem>>, %arg2: memref<4x16x256xf32, #tpu.memory_space<vmem>>, %arg3: memref<4x16x256xf32, #tpu.memory_space<vmem>>) attributes {dimension_semantics = [#tpu.dimension_semantics<arbitrary>], iteration_bounds = array<i64: 1>, scalar_prefetch = 1 : i64, scratch_operands = 0 : i64, tpu.core_type = #tpu.core_type<tc>, window_params = [{pipeline_mode = #tpu.pipeline_mode<synchronous>, transform_indices = @transform_0, window_bounds = array<i64: 4, 16, 256>}, {pipeline_mode = #tpu.pipeline_mode<synchronous>, transform_indices = @transform_1, window_bounds = array<i64: 4, 16, 256>}]} {
    %c0 = arith.constant 0 : index
    %0 = memref.load %arg1[%c0] : memref<24xf32, #tpu.memory_space<smem>>
    %c1 = arith.constant 1 : index
    %1 = memref.load %arg1[%c1] : memref<24xf32, #tpu.memory_space<smem>>
    %c2 = arith.constant 2 : index
    %2 = memref.load %arg1[%c2] : memref<24xf32, #tpu.memory_space<smem>>
    %c3 = arith.constant 3 : index
    %3 = memref.load %arg1[%c3] : memref<24xf32, #tpu.memory_space<smem>>
    %c4 = arith.constant 4 : index
    %4 = memref.load %arg1[%c4] : memref<24xf32, #tpu.memory_space<smem>>
    %c5 = arith.constant 5 : index
    %5 = memref.load %arg1[%c5] : memref<24xf32, #tpu.memory_space<smem>>
    %c0_0 = arith.constant 0 : index
    %c0_1 = arith.constant 0 : index
    %c0_2 = arith.constant 0 : index
    %6 = vector.load %arg2[%c0_0, %c0_1, %c0_2] : memref<4x16x256xf32, #tpu.memory_space<vmem>>, vector<1x16x256xf32>
    %7 = vector.shape_cast %6 : vector<1x16x256xf32> to vector<16x256xf32>
    %8 = vector.broadcast %1 : f32 to vector<16x256xf32>
    %9 = arith.mulf %8, %7 : vector<16x256xf32>
    %10 = vector.broadcast %0 : f32 to vector<16x256xf32>
    %11 = arith.addf %10, %9 : vector<16x256xf32>
    %12 = vector.broadcast %4 : f32 to vector<16x256xf32>
    %13 = arith.cmpf olt, %7, %12 : vector<16x256xf32>
    %14 = vector.broadcast %5 : f32 to vector<16x256xf32>
    %15 = arith.cmpf ole, %7, %14 : vector<16x256xf32>
    %16 = vector.broadcast %3 : f32 to vector<16x256xf32>
    %17 = arith.select %15, %11, %16 : vector<16x256xi1>, vector<16x256xf32>
    %18 = vector.broadcast %2 : f32 to vector<16x256xf32>
    %19 = arith.select %13, %18, %17 : vector<16x256xi1>, vector<16x256xf32>
    %c0_3 = arith.constant 0 : index
    %c0_4 = arith.constant 0 : index
    %c0_5 = arith.constant 0 : index
    %20 = vector.load %arg3[%c0_3, %c0_4, %c0_5] : memref<4x16x256xf32, #tpu.memory_space<vmem>>, vector<1x16x256xf32>
    %21 = vector.shape_cast %20 : vector<1x16x256xf32> to vector<16x256xf32>
    %22 = vector.shape_cast %19 : vector<16x256xf32> to vector<1x16x256xf32>
    tpu.vector_store %arg3[%c0_3, %c0_4, %c0_5], %22 {strides = array<i32>} : memref<4x16x256xf32, #tpu.memory_space<vmem>>, vector<1x16x256xf32>,
    %c6 = arith.constant 6 : index
    %23 = memref.load %arg1[%c6] : memref<24xf32, #tpu.memory_space<smem>>
    %c7 = arith.constant 7 : index
    %24 = memref.load %arg1[%c7] : memref<24xf32, #tpu.memory_space<smem>>
    %c8 = arith.constant 8 : index
    %25 = memref.load %arg1[%c8] : memref<24xf32, #tpu.memory_space<smem>>
    %c9 = arith.constant 9 : index
    %26 = memref.load %arg1[%c9] : memref<24xf32, #tpu.memory_space<smem>>
    %c10 = arith.constant 10 : index
    %27 = memref.load %arg1[%c10] : memref<24xf32, #tpu.memory_space<smem>>
    %c11 = arith.constant 11 : index
    %28 = memref.load %arg1[%c11] : memref<24xf32, #tpu.memory_space<smem>>
    %c1_6 = arith.constant 1 : index
    %c0_7 = arith.constant 0 : index
    %c0_8 = arith.constant 0 : index
    %29 = vector.load %arg2[%c1_6, %c0_7, %c0_8] : memref<4x16x256xf32, #tpu.memory_space<vmem>>, vector<1x16x256xf32>
    %30 = vector.shape_cast %29 : vector<1x16x256xf32> to vector<16x256xf32>
    %31 = vector.broadcast %24 : f32 to vector<16x256xf32>
    %32 = arith.mulf %31, %30 : vector<16x256xf32>
    %33 = vector.broadcast %23 : f32 to vector<16x256xf32>
    %34 = arith.addf %33, %32 : vector<16x256xf32>
    %35 = vector.broadcast %27 : f32 to vector<16x256xf32>
    %36 = arith.cmpf olt, %30, %35 : vector<16x256xf32>
    %37 = vector.broadcast %28 : f32 to vector<16x256xf32>
    %38 = arith.cmpf ole, %30, %37 : vector<16x256xf32>
    %39 = vector.broadcast %26 : f32 to vector<16x256xf32>
    %40 = arith.select %38, %34, %39 : vector<16x256xi1>, vector<16x256xf32>
    %41 = vector.broadcast %25 : f32 to vector<16x256xf32>
    %42 = arith.select %36, %41, %40 : vector<16x256xi1>, vector<16x256xf32>
    %c1_9 = arith.constant 1 : index
    %c0_10 = arith.constant 0 : index
    %c0_11 = arith.constant 0 : index
    %43 = vector.load %arg3[%c1_9, %c0_10, %c0_11] : memref<4x16x256xf32, #tpu.memory_space<vmem>>, vector<1x16x256xf32>
    %44 = vector.shape_cast %43 : vector<1x16x256xf32> to vector<16x256xf32>
    %45 = vector.shape_cast %42 : vector<16x256xf32> to vector<1x16x256xf32>
    tpu.vector_store %arg3[%c1_9, %c0_10, %c0_11], %45 {strides = array<i32>} : memref<4x16x256xf32, #tpu.memory_space<vmem>>, vector<1x16x256xf32>,
    %c12 = arith.constant 12 : index
    %46 = memref.load %arg1[%c12] : memref<24xf32, #tpu.memory_space<smem>>
    %c13 = arith.constant 13 : index
    %47 = memref.load %arg1[%c13] : memref<24xf32, #tpu.memory_space<smem>>
    %c14 = arith.constant 14 : index
    %48 = memref.load %arg1[%c14] : memref<24xf32, #tpu.memory_space<smem>>
    %c15 = arith.constant 15 : index
    %49 = memref.load %arg1[%c15] : memref<24xf32, #tpu.memory_space<smem>>
    %c16 = arith.constant 16 : index
    %50 = memref.load %arg1[%c16] : memref<24xf32, #tpu.memory_space<smem>>
    %c17 = arith.constant 17 : index
    %51 = memref.load %arg1[%c17] : memref<24xf32, #tpu.memory_space<smem>>
    %c2_12 = arith.constant 2 : index
    %c0_13 = arith.constant 0 : index
    %c0_14 = arith.constant 0 : index
    %52 = vector.load %arg2[%c2_12, %c0_13, %c0_14] : memref<4x16x256xf32, #tpu.memory_space<vmem>>, vector<1x16x256xf32>
    %53 = vector.shape_cast %52 : vector<1x16x256xf32> to vector<16x256xf32>
    %54 = vector.broadcast %47 : f32 to vector<16x256xf32>
    %55 = arith.mulf %54, %53 : vector<16x256xf32>
    %56 = vector.broadcast %46 : f32 to vector<16x256xf32>
    %57 = arith.addf %56, %55 : vector<16x256xf32>
    %58 = vector.broadcast %50 : f32 to vector<16x256xf32>
    %59 = arith.cmpf olt, %53, %58 : vector<16x256xf32>
    %60 = vector.broadcast %51 : f32 to vector<16x256xf32>
    %61 = arith.cmpf ole, %53, %60 : vector<16x256xf32>
    %62 = vector.broadcast %49 : f32 to vector<16x256xf32>
    %63 = arith.select %61, %57, %62 : vector<16x256xi1>, vector<16x256xf32>
    %64 = vector.broadcast %48 : f32 to vector<16x256xf32>
    %65 = arith.select %59, %64, %63 : vector<16x256xi1>, vector<16x256xf32>
    %c2_15 = arith.constant 2 : index
    %c0_16 = arith.constant 0 : index
    %c0_17 = arith.constant 0 : index
    %66 = vector.load %arg3[%c2_15, %c0_16, %c0_17] : memref<4x16x256xf32, #tpu.memory_space<vmem>>, vector<1x16x256xf32>
    %67 = vector.shape_cast %66 : vector<1x16x256xf32> to vector<16x256xf32>
    %68 = vector.shape_cast %65 : vector<16x256xf32> to vector<1x16x256xf32>
    tpu.vector_store %arg3[%c2_15, %c0_16, %c0_17], %68 {strides = array<i32>} : memref<4x16x256xf32, #tpu.memory_space<vmem>>, vector<1x16x256xf32>,
    %c18 = arith.constant 18 : index
    %69 = memref.load %arg1[%c18] : memref<24xf32, #tpu.memory_space<smem>>
    %c19 = arith.constant 19 : index
    %70 = memref.load %arg1[%c19] : memref<24xf32, #tpu.memory_space<smem>>
    %c20 = arith.constant 20 : index
    %71 = memref.load %arg1[%c20] : memref<24xf32, #tpu.memory_space<smem>>
    %c21 = arith.constant 21 : index
    %72 = memref.load %arg1[%c21] : memref<24xf32, #tpu.memory_space<smem>>
    %c22 = arith.constant 22 : index
    %73 = memref.load %arg1[%c22] : memref<24xf32, #tpu.memory_space<smem>>
    %c23 = arith.constant 23 : index
    %74 = memref.load %arg1[%c23] : memref<24xf32, #tpu.memory_space<smem>>
    %c3_18 = arith.constant 3 : index
    %c0_19 = arith.constant 0 : index
    %c0_20 = arith.constant 0 : index
    %75 = vector.load %arg2[%c3_18, %c0_19, %c0_20] : memref<4x16x256xf32, #tpu.memory_space<vmem>>, vector<1x16x256xf32>
    %76 = vector.shape_cast %75 : vector<1x16x256xf32> to vector<16x256xf32>
    %77 = vector.broadcast %70 : f32 to vector<16x256xf32>
    %78 = arith.mulf %77, %76 : vector<16x256xf32>
    %79 = vector.broadcast %69 : f32 to vector<16x256xf32>
    %80 = arith.addf %79, %78 : vector<16x256xf32>
    %81 = vector.broadcast %73 : f32 to vector<16x256xf32>
    %82 = arith.cmpf olt, %76, %81 : vector<16x256xf32>
    %83 = vector.broadcast %74 : f32 to vector<16x256xf32>
    %84 = arith.cmpf ole, %76, %83 : vector<16x256xf32>
    %85 = vector.broadcast %72 : f32 to vector<16x256xf32>
    %86 = arith.select %84, %80, %85 : vector<16x256xi1>, vector<16x256xf32>
    %87 = vector.broadcast %71 : f32 to vector<16x256xf32>
    %88 = arith.select %82, %87, %86 : vector<16x256xi1>, vector<16x256xf32>
    %c3_21 = arith.constant 3 : index
    %c0_22 = arith.constant 0 : index
    %c0_23 = arith.constant 0 : index
    %89 = vector.load %arg3[%c3_21, %c0_22, %c0_23] : memref<4x16x256xf32, #tpu.memory_space<vmem>>, vector<1x16x256xf32>
    %90 = vector.shape_cast %89 : vector<1x16x256xf32> to vector<16x256xf32>
    %91 = vector.shape_cast %88 : vector<16x256xf32> to vector<1x16x256xf32>
    tpu.vector_store %arg3[%c3_21, %c0_22, %c0_23], %91 {strides = array<i32>} : memref<4x16x256xf32, #tpu.memory_space<vmem>>, vector<1x16x256xf32>,
    return
  }
  func.func @transform_0(%arg0: i32, %arg1: memref<24xf32, #tpu.memory_space<smem>>) -> (i32, i32, i32) {
    %c0_i32 = arith.constant 0 : i32
    %c0_i32_0 = arith.constant 0 : i32
    %c0_i32_1 = arith.constant 0 : i32
    %c0_i32_2 = arith.constant 0 : i32
    return %c0_i32, %c0_i32_0, %c0_i32_1 : i32, i32, i32
  }
  func.func @transform_1(%arg0: i32, %arg1: memref<24xf32, #tpu.memory_space<smem>>) -> (i32, i32, i32) {
    %c0_i32 = arith.constant 0 : i32
    %c0_i32_0 = arith.constant 0 : i32
    %c0_i32_1 = arith.constant 0 : i32
    %c0_i32_2 = arith.constant 0 : i32
    return %c0_i32, %c0_i32_0, %c0_i32_1 : i32, i32, i32
  }
}

</mosaic_0001>

<bundles_post_ra>
// kernel: tpu_custom_call.1
= control target key start
LH: loop header
LB: loop body
LE: loop exit
PB: predicated region body
PF: predicated region fallthrough
CT: control target
= control target key end

     0   :  { %s309_s9 = smov [#allocation3]   ;;  %s409_s0 = inlined_call_operand.hbm [shape: f32[24], index: 0, kind: input, shape index: {}]   ;;  %s410_s1 = inlined_call_operand.hbm [shape: f32[4,16,256], index: 1, kind: input, shape index: {}]   ;;  %s411_s2 = inlined_call_operand.hbm [shape: f32[4,16,256], index: 2, kind: output, shape index: {}]  }
   0x1   :  { %8 = dma.hbm_to_smem %s409_s0, 16, %s309_s9, [#allocation2] }
   0x2   :  { %303 = dma.done.wait [#allocation2], 16 }
   0x3   :  { %304 = vsyncadd [#allocation2], 4294967280 }
   0x4   :  { %10 = sfence }
   0x5   :  { %11 = vsyncpa [#allocation5], 0 }
   0x6   :  { %12 = vsyncpa [#allocation6], 0  ;;  %s310_s12 = smov [#allocation4]  }
   0x7   :  { %s18_s13 = sshll.u32 %s310_s12, 4  ;;  %s19_s13 = int_to_ptr.vmem [resolvable:$true] %s18_s13 }
   0x8   :  { %s271_s14 = scalar_lea.vmem %s19_s13, 2048  ;;  %p276_p1 = scmp.lt.s32.totalorder %s19_s13, %s19_s13 }
   0x9   :  { %p272_p0 = scmp.ne.s32.totalorder %s19_s13, %s271_s14  ;;  %p277_p2 = scmp.lt.s32.totalorder %s271_s14, %s271_s14 }
   0xb   :  { %p278_p3 = por %p277_p2, %p276_p1 }
   0xd   :  { %p279_p4 = pnand %p278_p3, %p272_p0 }
   0xf   :  { %282 = shalt.err (!%p279_p4)
}
  0x10   :  { %s311_s15 = smov 256   ;;  %s312_s16 = smov 16  }
  0x11   :  { %24 = dma.hbm_to_vmem [thread:$0]  %s410_s1, 2048, %s19_s13, [#allocation5], %s311_s15, %s311_s15, %s312_s16  }
  0x12   :  { %305 = dma.done.wait [#allocation5], 2048  }
  0x13   :  { %306 = vsyncadd [#allocation5], 4294965248  ;;  %s28_s18 = sld [smem:[#allocation3]]  ;;  %v34_v0 = vld [vmem:[#allocation4] sm:$0xff]  ;;  %v35_v1 = vld [vmem:[#allocation4 + $0x8] sm:$0xff]  ;;  %s313_s13 = smov [#allocation7]  }
  0x14   :  { %s227_s19 = sld [smem:[#allocation3 + $0x1]]  ;;  %v36_v2 = vld [vmem:[#allocation4 + $0x10] sm:$0xff]  ;;  %v37_v5 = vld [vmem:[#allocation4 + $0x18] sm:$0xff]  ;;  %v79_v21 = vld [vmem:[#allocation4 + $0x20] sm:$0xff]  ;;  %s215_s14 = sshll.u32 %s313_s13, 4  ;;  %s216_s14 = int_to_ptr.vmem [resolvable:$true] %s215_s14 }
  0x15   :  { %s228_s20 = sld [smem:[#allocation3 + $0x2]]  ;;  %v80_v25 = vld [vmem:[#allocation4 + $0x28] sm:$0xff]  ;;  %v81_v30 = vld [vmem:[#allocation4 + $0x30] sm:$0xff]  ;;  %v82_v35 = vld [vmem:[#allocation4 + $0x38] sm:$0xff]  ;;  %s283_s0 = scalar_lea.vmem %s216_s14, 2048 }
  0x16   :  { %s229_s21 = sld [smem:[#allocation3 + $0x3]]  ;;  %v125_v42 = vld [vmem:[#allocation4 + $0x40] sm:$0xff]  ;;  %v126_v53 = vld [vmem:[#allocation4 + $0x48] sm:$0xff]  ;;  %v127_v58 = vld [vmem:[#allocation4 + $0x50] sm:$0xff]  ;;  %p284_p5 = scmp.ne.s32.totalorder %s216_s14, %s283_s0 }
  0x17   :  { %s230_s22 = sld [smem:[#allocation3 + $0x4]]  ;;  %v128_v61 = vld [vmem:[#allocation4 + $0x58] sm:$0xff]  ;;  %p288_p6 = scmp.lt.s32.totalorder %s216_s14, %s216_s14 }
  0x18   :  { %s231_s23 = sld [smem:[#allocation3 + $0x5]]  ;;  %p289_p7 = scmp.lt.s32.totalorder %s283_s0, %s283_s0 }
  0x19   :  { %s338_s24 = sld [smem:[#allocation3 + $0x6]]  ;;  %v43_v4 = vstv %s28_s18 }
  0x1a   :  { %v38_v3 = vstv %s227_s19  ;;  %s340_s25 = sld [smem:[#allocation3 + $0x7]]  ;;  %p290_p8 = por %p289_p7, %p288_p6 }
  0x1b   :  { %v39_v6 = vmul.f32 %v38_v3, %v34_v0  ;;  %v40_v7 = vmul.f32 %v38_v3, %v35_v1  ;;  %v41_v8 = vmul.f32 %v38_v3, %v36_v2  ;;  %s342_s1 = sld [smem:[#allocation3 + $0x8]]  ;;  %v63_v10 = vstv %s228_s20 }
  0x1c   :  { %v58_v9 = vstv %s229_s21  ;;  %v42_v11 = vmul.f32 %v38_v3, %v37_v5  ;;  %s344_s26 = sld [smem:[#allocation3 + $0x9]]  ;;  %v171_v3 = vld [vmem:[#allocation4 + $0x60] sm:$0xff]  ;;  %p291_p9 = pnand %p290_p8, %p284_p5 }
  0x1d   :  { %v44_v12 = vadd.f32 %v43_v4, %v39_v6  ;;  %v48_v13 = vstv %s230_s22  ;;  %v45_v14 = vadd.f32 %v43_v4, %v40_v7  ;;  %v46_v15 = vadd.f32 %v43_v4, %v41_v8  ;;  %s346_s27 = sld [smem:[#allocation3 + $0xa]] }
  0x1e   :  { %vm49_vm0 = vcmp.lt.f32.partialorder %v34_v0, %v48_v13  ;;  %v53_v16 = vstv %s231_s23  ;;  %vm50_vm1 = vcmp.lt.f32.partialorder %v35_v1, %v48_v13  ;;  %vm51_vm2 = vcmp.lt.f32.partialorder %v36_v2, %v48_v13  ;;  %s348_s28 = sld [smem:[#allocation3 + $0xb]] }
  0x1f   :  { %vm54_vm3 = vcmp.le.f32.partialorder %v34_v0, %v53_v16  ;;  %vm55_vm4 = vcmp.le.f32.partialorder %v35_v1, %v53_v16  ;;  %vm56_vm5 = vcmp.le.f32.partialorder %v36_v2, %v53_v16  ;;  %v47_v17 = vadd.f32 %v43_v4, %v42_v11  ;;  %s350_s29 = sld [smem:[#allocation3 + $0xc]] }
  0x20   :  { %v59_v18 = vsel %vm54_vm3, %v44_v12, %v58_v9  ;;  %v60_v19 = vsel %vm55_vm4, %v45_v14, %v58_v9  ;;  %v61_v20 = vsel %vm56_vm5, %v46_v15, %v58_v9  ;;  %vm52_vm6 = vcmp.lt.f32.partialorder %v37_v5, %v48_v13  ;;  %s352_s30 = sld [smem:[#allocation3 + $0xd]] }
  0x21   :  { %v64_v22 = vsel %vm49_vm0, %v63_v10, %v59_v18  ;;  %v65_v23 = vsel %vm50_vm1, %v63_v10, %v60_v19  ;;  %v66_v24 = vsel %vm51_vm2, %v63_v10, %v61_v20  ;;  %vm57_vm7 = vcmp.le.f32.partialorder %v37_v5, %v53_v16  ;;  %s355_s3 = sld [smem:[#allocation3 + $0xe]] }
  0x22   :  { %68 = vst [vmem:[#allocation7] sm:$0xff] %v64_v22  ;;  %69 = vst [vmem:[#allocation7 + $0x8] sm:$0xff] %v65_v23  ;;  %v62_v26 = vsel %vm57_vm7, %v47_v17, %v58_v9  ;;  %v83_v27 = vstv %s340_s25  ;;  %v88_v28 = vstv %s338_s24  ;;  %v103_v29 = vstv %s344_s26  ;;  %s360_s4 = sld [smem:[#allocation3 + $0xf]]  ;;  %v172_v17 = vld [vmem:[#allocation4 + $0x68] sm:$0xff] }
  0x23   :  { %70 = vst [vmem:[#allocation7 + $0x10] sm:$0xff] %v66_v24  ;;  %v67_v31 = vsel %vm52_vm6, %v63_v10, %v62_v26  ;;  %v84_v32 = vmul.f32 %v83_v27, %v79_v21  ;;  %v93_v33 = vstv %s346_s27  ;;  %v108_v34 = vstv %s342_s1  ;;  %s365_s5 = sld [smem:[#allocation3 + $0x10]] }
  0x24   :  { %71 = vst [vmem:[#allocation7 + $0x18] sm:$0xff] %v67_v31  ;;  %vm94_vm8 = vcmp.lt.f32.partialorder %v79_v21, %v93_v33  ;;  %v98_v36 = vstv %s348_s28  ;;  %v85_v37 = vmul.f32 %v83_v27, %v80_v25  ;;  %vm95_vm9 = vcmp.lt.f32.partialorder %v80_v25, %v93_v33  ;;  %s368_s6 = sld [smem:[#allocation3 + $0x11]] }
  0x25   :  { %v89_v38 = vadd.f32 %v88_v28, %v84_v32  ;;  %vm99_vm10 = vcmp.le.f32.partialorder %v79_v21, %v98_v36  ;;  %vm100_vm11 = vcmp.le.f32.partialorder %v80_v25, %v98_v36  ;;  %v86_v39 = vmul.f32 %v83_v27, %v81_v30  ;;  %s370_s7 = sld [smem:[#allocation3 + $0x12]]  ;;  %v173_v21 = vld [vmem:[#allocation4 + $0x70] sm:$0xff]  ;;  %v174_v25 = vld [vmem:[#allocation4 + $0x78] sm:$0xff] }
  0x26   :  { %v90_v40 = vadd.f32 %v88_v28, %v85_v37  ;;  %vm96_vm12 = vcmp.lt.f32.partialorder %v81_v30, %v93_v33  ;;  %vm101_vm13 = vcmp.le.f32.partialorder %v81_v30, %v98_v36  ;;  %v87_v41 = vmul.f32 %v83_v27, %v82_v35  ;;  %s372_s8 = sld [smem:[#allocation3 + $0x13]] }
  0x27   :  { %v104_v43 = vsel %vm99_vm10, %v89_v38, %v103_v29  ;;  %v91_v44 = vadd.f32 %v88_v28, %v86_v39  ;;  %vm97_vm14 = vcmp.lt.f32.partialorder %v82_v35, %v93_v33  ;;  %vm102_vm15 = vcmp.le.f32.partialorder %v82_v35, %v98_v36  ;;  %s376_s9 = sld [smem:[#allocation3 + $0x14]] }
  0x28   :  { %v109_v45 = vsel %vm94_vm8, %v108_v34, %v104_v43  ;;  %v105_v46 = vsel %vm100_vm11, %v90_v40, %v103_v29  ;;  %v92_v47 = vadd.f32 %v88_v28, %v87_v41  ;;  %v129_v48 = vstv %s352_s30  ;;  %s381_s10 = sld [smem:[#allocation3 + $0x16]] }
  0x29   :  { %114 = vst [vmem:[#allocation7 + $0x20] sm:$0xff] %v109_v45  ;;  %v110_v49 = vsel %vm95_vm9, %v108_v34, %v105_v46  ;;  %v106_v50 = vsel %vm101_vm13, %v91_v44, %v103_v29  ;;  %v130_v51 = vmul.f32 %v129_v48, %v125_v42  ;;  %v134_v52 = vstv %s350_s29  ;;  %s387_s11 = sld [smem:[#allocation3 + $0x17]] }
  0x2a   :  { %115 = vst [vmem:[#allocation7 + $0x28] sm:$0xff] %v110_v49  ;;  %v111_v54 = vsel %vm96_vm12, %v108_v34, %v106_v50  ;;  %v107_v55 = vsel %vm102_vm15, %v92_v47, %v103_v29  ;;  %v139_v56 = vstv %s365_s5  ;;  %v144_v57 = vstv %s368_s6  ;;  %s390_s12 = sld [smem:[#allocation3 + $0x15]] }
  0x2b   :  { %116 = vst [vmem:[#allocation7 + $0x30] sm:$0xff] %v111_v54  ;;  %v112_v59 = vsel %vm97_vm14, %v108_v34, %v107_v55  ;;  %v135_v60 = vadd.f32 %v134_v52, %v130_v51  ;;  %vm140_vm0 = vcmp.lt.f32.partialorder %v125_v42, %v139_v56  ;;  %vm145_vm1 = vcmp.le.f32.partialorder %v125_v42, %v144_v57 }
  0x2c   :  { %117 = vst [vmem:[#allocation7 + $0x38] sm:$0xff] %v112_v59  ;;  %v149_v62 = vstv %s360_s4  ;;  %v154_v63 = vstv %s355_s3  ;;  %v131_v0 = vmul.f32 %v129_v48, %v126_v53  ;;  %vm141_vm2 = vcmp.lt.f32.partialorder %v126_v53, %v139_v56 }
  0x2d   :  { %v150_v1 = vsel %vm145_vm1, %v135_v60, %v149_v62  ;;  %vm146_vm3 = vcmp.le.f32.partialorder %v126_v53, %v144_v57  ;;  %v132_v2 = vmul.f32 %v129_v48, %v127_v58  ;;  %vm142_vm4 = vcmp.lt.f32.partialorder %v127_v58, %v139_v56 }
  0x2e   :  { %v155_v4 = vsel %vm140_vm0, %v154_v63, %v150_v1  ;;  %v136_v5 = vadd.f32 %v134_v52, %v131_v0  ;;  %vm147_vm5 = vcmp.le.f32.partialorder %v127_v58, %v144_v57  ;;  %v133_v6 = vmul.f32 %v129_v48, %v128_v61 }
  0x2f   :  { %160 = vst [vmem:[#allocation7 + $0x40] sm:$0xff] %v155_v4  ;;  %v137_v7 = vadd.f32 %v134_v52, %v132_v2  ;;  %vm143_vm6 = vcmp.lt.f32.partialorder %v128_v61, %v139_v56  ;;  %vm148_vm7 = vcmp.le.f32.partialorder %v128_v61, %v144_v57  ;;  %v175_v8 = vstv %s372_s8 }
  0x30   :  { %v151_v9 = vsel %vm146_vm3, %v136_v5, %v149_v62  ;;  %v138_v10 = vadd.f32 %v134_v52, %v133_v6  ;;  %v176_v11 = vmul.f32 %v175_v8, %v171_v3  ;;  %v180_v12 = vstv %s370_s7 }
  0x31   :  { %v156_v13 = vsel %vm141_vm2, %v154_v63, %v151_v9  ;;  %v152_v14 = vsel %vm147_vm5, %v137_v7, %v149_v62  ;;  %v185_v15 = vstv %s381_s10  ;;  %v190_v16 = vstv %s387_s11 }
  0x32   :  { %161 = vst [vmem:[#allocation7 + $0x48] sm:$0xff] %v156_v13  ;;  %v157_v18 = vsel %vm142_vm4, %v154_v63, %v152_v14  ;;  %v153_v19 = vsel %vm148_vm7, %v138_v10, %v149_v62  ;;  %v181_v20 = vadd.f32 %v180_v12, %v176_v11  ;;  %vm186_vm8 = vcmp.lt.f32.partialorder %v171_v3, %v185_v15 }
  0x33   :  { %162 = vst [vmem:[#allocation7 + $0x50] sm:$0xff] %v157_v18  ;;  %v158_v22 = vsel %vm143_vm6, %v154_v63, %v153_v19  ;;  %vm191_vm9 = vcmp.le.f32.partialorder %v171_v3, %v190_v16  ;;  %v195_v23 = vstv %s390_s12  ;;  %v200_v24 = vstv %s376_s9 }
  0x34   :  { %163 = vst [vmem:[#allocation7 + $0x58] sm:$0xff] %v158_v22  ;;  %v196_v26 = vsel %vm191_vm9, %v181_v20, %v195_v23  ;;  %v177_v27 = vmul.f32 %v175_v8, %v172_v17  ;;  %vm192_vm10 = vcmp.le.f32.partialorder %v172_v17, %v190_v16  ;;  %v178_v29 = vmul.f32 %v175_v8, %v173_v21 }
  0x35   :  { %v201_v28 = vsel %vm186_vm8, %v200_v24, %v196_v26  ;;  %vm187_vm11 = vcmp.lt.f32.partialorder %v172_v17, %v185_v15  ;;  %vm193_vm12 = vcmp.le.f32.partialorder %v173_v21, %v190_v16  ;;  %v179_v31 = vmul.f32 %v175_v8, %v174_v25 }
  0x36   :  { %206 = vst [vmem:[#allocation7 + $0x60] sm:$0xff] %v201_v28  ;;  %v182_v30 = vadd.f32 %v180_v12, %v177_v27  ;;  %v183_v32 = vadd.f32 %v180_v12, %v178_v29  ;;  %vm188_vm13 = vcmp.lt.f32.partialorder %v173_v21, %v185_v15  ;;  %vm194_vm14 = vcmp.le.f32.partialorder %v174_v25, %v190_v16 }
  0x37   :  { %v184_v34 = vadd.f32 %v180_v12, %v179_v31  ;;  %vm189_vm15 = vcmp.lt.f32.partialorder %v174_v25, %v185_v15 }
  0x38   :  { %v197_v33 = vsel %vm192_vm10, %v182_v30, %v195_v23  ;;  %v198_v36 = vsel %vm193_vm12, %v183_v32, %v195_v23 }
  0x39   :  { %v202_v35 = vsel %vm187_vm11, %v200_v24, %v197_v33  ;;  %v203_v37 = vsel %vm188_vm13, %v200_v24, %v198_v36  ;;  %v199_v38 = vsel %vm194_vm14, %v184_v34, %v195_v23 }
  0x3a   :  { %207 = vst [vmem:[#allocation7 + $0x68] sm:$0xff] %v202_v35  ;;  %208 = vst [vmem:[#allocation7 + $0x70] sm:$0xff] %v203_v37  ;;  %v204_v39 = vsel %vm189_vm15, %v200_v24, %v199_v38 }
  0x3b   :  { %209 = vst [vmem:[#allocation7 + $0x78] sm:$0xff] %v204_v39 }
  0x3c   :  { %294 = shalt.err (!%p291_p9)
}
  0x3d   :  { %221 = dma.vmem_to_hbm [thread:$0]  %s216_s14, 2048, %s411_s2, [#allocation6], %s311_s15, %s311_s15, %s312_s16  }
  0x3e   :  { %307 = dma.done.wait [#allocation6], 2048  }
  0x3f   :  { %308 = vsyncadd [#allocation6], 4294965248 }
  0x40   :  { %225 = vsyncpa [#allocation5], 1 }
  0x41   :  { %226 = vsyncpa [#allocation6], 1 }

</bundles_post_ra>
